<compile_context>
chip_gen: v7x
topology: tpu7x:2x2x1
jax: 0.10.0
libtpu: 0.0.40
codegen_flags: <defaults>
</compile_context>

<pallas_src>
import jax
import jax.numpy as jnp
from jax.experimental import pallas as pl
from jax.experimental.pallas import tpu as pltpu


_LANE = 128


# ------------------------------ fused kernel -------------------------------
def _fwd_kernel(x_ref, w_ref, b_ref, wd_ref, y_ref, pen_ref):
    # x_ref  : (tile_b, D)  VMEM  streamed batch tile (f32 or bf16 on the wire)
    # w_ref  : (1, D)       VMEM  weight row, resident (constant index_map)
    # b_ref  : (1, 1)       SMEM  bias scalar
    # wd_ref : (1, 1)       SMEM  weight_decay scalar
    # y_ref  : (1, tile_b)  VMEM  lane-dense output slab for this tile
    # pen_ref: (1, 1)       VMEM  (lambda/2) * sum(W**2)
    x = x_ref[...].astype(jnp.float32)          # f32 accumulate (v5e-safe VPU path)
    w = w_ref[...].astype(jnp.float32)          # (1, D) -> broadcasts over rows

    # VPU multiply + lane reduction instead of an N=1 MXU matmul.
    y = jnp.sum(x * w, axis=-1) + b_ref[0, 0]   # (tile_b,)
    y_ref[...] = y.reshape(y_ref.shape).astype(y_ref.dtype)

    # Fused L2 penalty from the already-resident weight block.
    # Written unconditionally every step (identical value) so that, under
    # megacore "parallel" sharding, every core's copy of this resident block is
    # valid before writeback (a pl.when(i==0) guard would leave core 1's copy
    # uninitialized).
    pen_ref[...] = (0.5 * wd_ref[0, 0]) * jnp.sum(w * w, axis=-1, keepdims=True)


# --------------------------------- wrapper ---------------------------------
def _round_up(n, m):
    return ((n + m - 1) // m) * m


def _choose_tile_b(batch, d, itemsize):
    """Batch-tile rows: lane-aligned, VMEM-safe on all generations, >=2 steps when possible."""
    # Keep the double-buffered x tile around <= 8 MiB: comfortably inside the scoped
    # VMEM default on v5e (16 MiB) and leaves ample headroom on v6e/v7x.
    budget_bytes = 8 * 1024 * 1024
    rows_by_vmem = (budget_bytes // (2 * d * itemsize)) // _LANE * _LANE
    tile = max(_LANE, min(2048, rows_by_vmem))
    # Never bigger than the lane-padded batch.
    tile = min(tile, _round_up(batch, _LANE))
    # Prefer >= 2 grid steps (v7x dual-TC megacore + pipelining) when batch spans
    # more than one lane tile.
    if batch > _LANE:
        tile = min(tile, _round_up(pl.cdiv(batch, 2), _LANE))
    return max(_LANE, tile)
    # Note: for extremely large D (>~8K f32) a second "arbitrary" grid axis over D
    # with an f32 accumulator would be needed to keep tiles in budget.


def linear_forward_with_penalty(x, weight, bias, weight_decay, *, tile_b=None):
    """Fused forward + L2 penalty.

    x: (B, D); weight: (1, D) (PyTorch nn.Linear layout); bias: (1,).
    Inputs may be f32 or bf16 (bf16 halves HBM traffic); accumulation is f32.
    Returns (y: (B, 1) in x.dtype, penalty: scalar f32).
    """
    B, D = x.shape
    assert weight.shape == (1, D)
    out_dtype = x.dtype

    if tile_b is None:
        tile_b = _choose_tile_b(B, D, jnp.dtype(x.dtype).itemsize)
    padded_B = _round_up(B, tile_b)
    if padded_B != B:
        # Pad ragged batches with zero rows (results are sliced away below).
        x = jnp.pad(x, ((0, padded_B - B), (0, 0)))
    num_tiles = padded_B // tile_b

    b_smem = jnp.asarray(bias, jnp.float32).reshape(1, 1)
    wd_smem = jnp.asarray(weight_decay, jnp.float32).reshape(1, 1)

    y_slab, pen = pl.pallas_call(
        _fwd_kernel,
        out_shape=(
            jax.ShapeDtypeStruct((num_tiles, tile_b), out_dtype),  # lane-dense y
            jax.ShapeDtypeStruct((1, 1), jnp.float32),             # L2 penalty
        ),
        grid_spec=pltpu.PrefetchScalarGridSpec(
            num_scalar_prefetch=0,
            grid=(num_tiles,),
            in_specs=[
                pl.BlockSpec((tile_b, D), lambda i: (i, 0)),          # x: streamed
                pl.BlockSpec((1, D), lambda i: (0, 0)),               # W row: resident
                pl.BlockSpec(memory_space=pltpu.MemorySpace.SMEM),    # bias scalar
                pl.BlockSpec(memory_space=pltpu.MemorySpace.SMEM),    # weight_decay
            ],
            out_specs=(
                pl.BlockSpec((1, tile_b), lambda i: (i, 0)),
                pl.BlockSpec((1, 1), lambda i: (0, 0)),
            ),
        ),
        compiler_params=pltpu.CompilerParams(
            dimension_semantics=("parallel",),
        ),
    )(x, weight, b_smem, wd_smem)

    y = y_slab.reshape(-1, 1)[:B]
    return y, pen[0, 0]


# ---------------------------------- driver ---------------------------------
if __name__ == "__main__":
    key = jax.random.PRNGKey(0)
    kx, kw, kb = jax.random.split(key, 3)

    batch, input_size = 8, 32
    weight_decay = 0.1

    # Deterministic parameter init (mimics nn.Linear's uniform(-1/sqrt(D), 1/sqrt(D))).
    bound = 1.0 / (input_size ** 0.5)
    weight = jax.random.uniform(kw, (1, input_size), jnp.float32, -bound, bound)
    bias = jax.random.uniform(kb, (1,), jnp.float32, -bound, bound)

    x = jax.random.normal(kx, (batch, input_size), jnp.float32)

    y, pen = linear_forward_with_penalty(x, weight, bias, weight_decay)
    jax.block_until_ready((y, pen))

    # Reference check in plain JAX.
    y_ref = x @ weight.T + bias
    pen_ref = 0.5 * weight_decay * jnp.sum(weight ** 2)
    assert y.shape == (batch, 1)
    assert jnp.allclose(y, y_ref, atol=1e-5, rtol=1e-5)
    assert jnp.allclose(pen, pen_ref, atol=1e-6, rtol=1e-6)

    print("KERNEL_OK")
</pallas_src>

<mosaic_0001>
module attributes {stable_mosaic.version = 11 : i64} {
  func.func @_fwd_kernel(%arg0: i32, %arg1: memref<128x32xf32, #tpu.memory_space<vmem>>, %arg2: memref<1x32xf32, #tpu.memory_space<vmem>>, %arg3: memref<1x1xf32, #tpu.memory_space<smem>>, %arg4: memref<1x1xf32, #tpu.memory_space<smem>>, %arg5: memref<1x128xf32, #tpu.memory_space<vmem>>, %arg6: memref<1x1xf32, #tpu.memory_space<vmem>>) attributes {dimension_semantics = [#tpu.dimension_semantics<parallel>], iteration_bounds = array<i64: 1>, scalar_prefetch = 0 : i64, scratch_operands = 0 : i64, tpu.core_type = #tpu.core_type<tc>, window_params = [{transform_indices = @transform_0, window_bounds = array<i64: 128, 32>}, {pipeline_mode = #tpu.pipeline_mode<synchronous>, transform_indices = @transform_1, window_bounds = array<i64: 1, 32>}, {transform_indices = @transform_2, window_bounds = array<i64: 1, 1>}, {transform_indices = @transform_3, window_bounds = array<i64: 1, 1>}, {transform_indices = @transform_4, window_bounds = array<i64: 1, 128>}, {pipeline_mode = #tpu.pipeline_mode<synchronous>, transform_indices = @transform_5, window_bounds = array<i64: 1, 1>}]} {
    %c0 = arith.constant 0 : index
    %c0_0 = arith.constant 0 : index
    %0 = vector.load %arg1[%c0, %c0_0] : memref<128x32xf32, #tpu.memory_space<vmem>>, vector<128x32xf32>
    %c0_1 = arith.constant 0 : index
    %c0_2 = arith.constant 0 : index
    %1 = vector.load %arg2[%c0_1, %c0_2] : memref<1x32xf32, #tpu.memory_space<vmem>>, vector<1x32xf32>
    %2 = vector.broadcast %1 : vector<1x32xf32> to vector<128x32xf32>
    %3 = arith.mulf %0, %2 : vector<128x32xf32>
    %cst = arith.constant dense<0.000000e+00> : vector<128xf32>
    %4 = vector.multi_reduction <add>, %3, %cst [1] : vector<128x32xf32> to vector<128xf32>
    %c0_3 = arith.constant 0 : index
    %c0_4 = arith.constant 0 : index
    %5 = memref.load %arg3[%c0_3, %c0_4] : memref<1x1xf32, #tpu.memory_space<smem>>
    %6 = vector.broadcast %5 : f32 to vector<128xf32>
    %7 = arith.addf %4, %6 : vector<128xf32>
    %8 = vector.shape_cast %7 : vector<128xf32> to vector<1x128xf32>
    %c0_5 = arith.constant 0 : index
    %c0_6 = arith.constant 0 : index
    %9 = vector.load %arg5[%c0_5, %c0_6] : memref<1x128xf32, #tpu.memory_space<vmem>>, vector<1x128xf32>
    tpu.vector_store %arg5[%c0_5, %c0_6], %8 {strides = array<i32>} : memref<1x128xf32, #tpu.memory_space<vmem>>, vector<1x128xf32>,
    %c0_7 = arith.constant 0 : index
    %c0_8 = arith.constant 0 : index
    %10 = memref.load %arg4[%c0_7, %c0_8] : memref<1x1xf32, #tpu.memory_space<smem>>
    %cst_9 = arith.constant 5.000000e-01 : f32
    %11 = arith.mulf %cst_9, %10 : f32
    %12 = arith.mulf %1, %1 : vector<1x32xf32>
    %cst_10 = arith.constant dense<0.000000e+00> : vector<1xf32>
    %13 = vector.multi_reduction <add>, %12, %cst_10 [1] : vector<1x32xf32> to vector<1xf32>
    %14 = vector.shape_cast %13 : vector<1xf32> to vector<1x1xf32>
    %15 = vector.broadcast %11 : f32 to vector<1x1xf32>
    %16 = arith.mulf %15, %14 : vector<1x1xf32>
    %c0_11 = arith.constant 0 : index
    %c0_12 = arith.constant 0 : index
    %17 = vector.load %arg6[%c0_11, %c0_12] : memref<1x1xf32, #tpu.memory_space<vmem>>, vector<1x1xf32>
    tpu.vector_store %arg6[%c0_11, %c0_12], %16 {strides = array<i32>} : memref<1x1xf32, #tpu.memory_space<vmem>>, vector<1x1xf32>,
    return
  }
  func.func @transform_0(%arg0: i32) -> (i32, i32) {
    %c0_i32 = arith.constant 0 : i32
    %c0_i32_0 = arith.constant 0 : i32
    return %arg0, %c0_i32 : i32, i32
  }
  func.func @transform_1(%arg0: i32) -> (i32, i32) {
    %c0_i32 = arith.constant 0 : i32
    %c0_i32_0 = arith.constant 0 : i32
    %c0_i32_1 = arith.constant 0 : i32
    return %c0_i32, %c0_i32_0 : i32, i32
  }
  func.func @transform_2(%arg0: i32) -> (i32, i32) {
    %c0_i32 = arith.constant 0 : i32
    %c0_i32_0 = arith.constant 0 : i32
    %c0_i32_1 = arith.constant 0 : i32
    return %c0_i32, %c0_i32_0 : i32, i32
  }
  func.func @transform_3(%arg0: i32) -> (i32, i32) {
    %c0_i32 = arith.constant 0 : i32
    %c0_i32_0 = arith.constant 0 : i32
    %c0_i32_1 = arith.constant 0 : i32
    return %c0_i32, %c0_i32_0 : i32, i32
  }
  func.func @transform_4(%arg0: i32) -> (i32, i32) {
    %c0_i32 = arith.constant 0 : i32
    %c0_i32_0 = arith.constant 0 : i32
    return %arg0, %c0_i32 : i32, i32
  }
  func.func @transform_5(%arg0: i32) -> (i32, i32) {
    %c0_i32 = arith.constant 0 : i32
    %c0_i32_0 = arith.constant 0 : i32
    %c0_i32_1 = arith.constant 0 : i32
    return %c0_i32, %c0_i32_0 : i32, i32
  }
}

</mosaic_0001>

<bundles_post_ra>
// kernel: tpu_custom_call.1
= control target key start
LH: loop header
LB: loop body
LE: loop exit
PB: predicated region body
PF: predicated region fallthrough
CT: control target
= control target key end

     0   :  { %13 = vsyncpa [#allocation5], 0  ;;  %v41_v0 = vlaneseq  ;;  %s598_s0 = inlined_call_operand.vmem [shape: f32[128,32], index: 0, kind: input, shape index: {}]   ;;  %s599_s1 = inlined_call_operand.vmem [shape: f32[1,32], index: 1, kind: input, shape index: {}]   ;;  %s600_s2 = inlined_call_operand.<no memory space> [shape: f32[1,1], index: 2, kind: input, shape index: {}]   ;;  %s601_s3 = inlined_call_operand.<no memory space> [shape: f32[1,1], index: 3, kind: input, shape index: {}]   ;;  %s602_s4 = inlined_call_operand.hbm [shape: f32[1,128], index: 4, kind: output, shape index: {0}]   ;;  %s603_s5 = inlined_call_operand.hbm [shape: f32[1,1], index: 5, kind: output, shape index: {1}]  }
   0x1   :  { %v386_v3 = vld [vmem:[%s599_s1] sm:$0x1]  ;;  %v25_v6 = vld [vmem:[%s598_s0 + $0x10] sm:$0xff]  ;;  %v24_v8 = vld [vmem:[%s598_s0 + $0x8] sm:$0xff] }
   0x2   :  { %v379_v1 = vshrl.u32 %v41_v0, 7  ;;  %v381_v2 = vand.u32 127, %v41_v0  ;;  %v23_v4 = vld [vmem:[%s598_s0] sm:$0xff]  ;;  %v26_v9 = vld [vmem:[%s598_s0 + $0x18] sm:$0xff] }
   0x4   :  { %v43_v5 = vsub.s32 0, %v379_v1  ;;  %v149_v7 = vsub.s32 %v381_v2, %v379_v1 }
   0x5   :  { %14 = vsyncpa [#allocation7], 0  ;;  %vm62_vm0 = vcmask 261120   ;;  %v27_v15 = vld [vmem:[%s598_s0 + $0x20] sm:$0xff]  ;;  %v28_v16 = vld [vmem:[%s598_s0 + $0x28] sm:$0xff]  ;;  %v442_v42 = vadd.s32 4294967280, %v381_v2 }
   0x6   :  { %v44_v10 = vrot.slane %v386_v3, %v43_v5  ;;  %v29_v23 = vld [vmem:[%s598_s0 + $0x30] sm:$0xff]  ;;  %v30_v24 = vld [vmem:[%s598_s0 + $0x38] sm:$0xff]  ;;  %v31_v29 = vld [vmem:[%s598_s0 + $0x40] sm:$0xff]  ;;  %v151_v46 = vadd.s32 4294967288, %v381_v2  ;;  %v165_v51 = vadd.s32 4294967272, %v381_v2  ;;  %v172_v56 = vadd.s32 4294967264, %v381_v2 }
   0x7   :  { %v32_v30 = vld [vmem:[%s598_s0 + $0x48] sm:$0xff]  ;;  %v33_v35 = vld [vmem:[%s598_s0 + $0x50] sm:$0xff]  ;;  %v34_v36 = vld [vmem:[%s598_s0 + $0x58] sm:$0xff]  ;;  %v161_v44 = vsub.s32 %v442_v42, %v379_v1  ;;  %v179_v60 = vadd.s32 4294967256, %v381_v2  ;;  %v468_v63 = vadd.s32 4294967248, %v381_v2  ;;  %v260_v5 = vmul.f32 %v386_v3, %v386_v3  ;;  %s259_s27 = smul.f32 0.5, %s601_s3 }
   0x8   :  { %v46_v11 = vmul.f32 %v44_v10, %v23_v4  ;;  %v48_v12 = vmul.f32 %v44_v10, %v25_v6  ;;  %v47_v13 = vmul.f32 %v44_v10, %v24_v8  ;;  %v49_v14 = vmul.f32 %v44_v10, %v26_v9  ;;  %v35_v41 = vld [vmem:[%s598_s0 + $0x60] sm:$0xff]  ;;  %v36_v43 = vld [vmem:[%s598_s0 + $0x68] sm:$0xff]  ;;  %v37_v50 = vld [vmem:[%s598_s0 + $0x70] sm:$0xff]  ;;  %s347_s3 = smov [#allocation4]   ;;  %s348_s29 = smov [#allocation6]  }
   0x9   :  { %v50_v21 = vmul.f32 %v44_v10, %v27_v15  ;;  %v51_v22 = vmul.f32 %v44_v10, %v28_v16  ;;  %v52_v27 = vmul.f32 %v44_v10, %v29_v23  ;;  %v53_v28 = vmul.f32 %v44_v10, %v30_v24  ;;  %v38_v52 = vld [vmem:[%s598_s0 + $0x78] sm:$0xff]  ;;  %s275_s28 = sshll.u32 %s347_s3, 4  ;;  %s285_s30 = sshll.u32 %s348_s29, 4  ;;  %s276_s28 = int_to_ptr.vmem [resolvable:$true] %s275_s28  ;;  %s566_s30 = int_to_ptr.vmem [resolvable:$true] %s285_s30 }
   0xa   :  { %v63_v17 = vsel %vm62_vm0, %v46_v11, 0.0  ;;  %v69_v18 = vsel %vm62_vm0, %v48_v12, 0.0  ;;  %v66_v19 = vsel %vm62_vm0, %v47_v13, 0.0  ;;  %v72_v20 = vsel %vm62_vm0, %v49_v14, 0.0  ;;  %s299_s6 = scalar_lea.vmem %s276_s28, 16  ;;  %s303_s7 = scalar_lea.vmem %s276_s28, 32 }
   0xb   :  { %64 = vadd.xlane.f32.xlu0 %v63_v17  ;;  %70 = vadd.xlane.f32.xlu1 %v69_v18  ;;  %v75_v25 = vsel %vm62_vm0, %v50_v21, 0.0  ;;  %v78_v26 = vsel %vm62_vm0, %v51_v22, 0.0  ;;  %v81_v31 = vsel %vm62_vm0, %v52_v27, 0.0  ;;  %v84_v32 = vsel %vm62_vm0, %v53_v28, 0.0  ;;  %p300_p0 = scmp.ne.s32.totalorder %s276_s28, %s299_s6  ;;  %p304_p1 = scmp.lt.s32.totalorder %s276_s28, %s276_s28 }
   0xc   :  { %v54_v33 = vmul.f32 %v44_v10, %v31_v29  ;;  %v55_v34 = vmul.f32 %v44_v10, %v32_v30  ;;  %v56_v37 = vmul.f32 %v44_v10, %v33_v35  ;;  %v57_v40 = vmul.f32 %v44_v10, %v34_v36  ;;  %p305_p2 = scmp.lt.s32.totalorder %s303_s7, %s299_s6 }
   0xd   :  { %v58_v45 = vmul.f32 %v44_v10, %v35_v41  ;;  %v59_v49 = vmul.f32 %v44_v10, %v36_v43  ;;  %v154_v53 = vsub.s32 %v151_v46, %v379_v1  ;;  %v168_v54 = vsub.s32 %v165_v51, %v379_v1 }
   0xe   :  { %v87_v38 = vsel %vm62_vm0, %v54_v33, 0.0  ;;  %v90_v39 = vsel %vm62_vm0, %v55_v34, 0.0  ;;  %v93_v47 = vsel %vm62_vm0, %v56_v37, 0.0  ;;  %v96_v48 = vsel %vm62_vm0, %v57_v40, 0.0  ;;  %p306_p3 = por %p305_p2, %p304_p1 }
   0xf   :  { %67 = vadd.xlane.f32.xlu0 %v66_v19  ;;  %73 = vadd.xlane.f32.xlu1 %v72_v20  ;;  %v60_v55 = vmul.f32 %v44_v10, %v37_v50  ;;  %v99_v57 = vsel %vm62_vm0, %v58_v45, 0.0  ;;  %v102_v58 = vsel %vm62_vm0, %v59_v49, 0.0  ;;  %v61_v59 = vmul.f32 %v44_v10, %v38_v52 }
  0x10   :  { %v175_v61 = vsub.s32 %v172_v56, %v379_v1  ;;  %v182_v62 = vsub.s32 %v179_v60, %v379_v1  ;;  %v193_v6 = vadd.s32 4294967240, %v381_v2  ;;  %vm261_vm1 = vcmask 253952   ;;  %p307_p4 = pnand %p306_p3, %p300_p0 }
  0x11   :  { %v105_v0 = vsel %vm62_vm0, %v60_v55, 0.0  ;;  %v108_v4 = vsel %vm62_vm0, %v61_v59, 0.0  ;;  %v189_v8 = vsub.s32 %v468_v63, %v379_v1  ;;  %v479_v10 = vadd.s32 4294967232, %v381_v2 }
  0x12   :  { %v196_v9 = vsub.s32 %v193_v6, %v379_v1  ;;  %v262_v11 = vsel %vm261_vm1, %v260_v5, 0.0  ;;  %v482_v12 = vadd.s32 4294967224, %v381_v2  ;;  %v489_v14 = vadd.s32 4294967216, %v381_v2 }
  0x13   :  { %76 = vadd.xlane.f32.xlu0 %v75_v25  ;;  %79 = vadd.xlane.f32.xlu1 %v78_v26  ;;  %v203_v3 = vsub.s32 %v479_v10, %v379_v1  ;;  %v492_v15 = vadd.s32 4294967208, %v381_v2  ;;  %v499_v18 = vadd.s32 4294967200, %v381_v2  ;;  %v502_v19 = vadd.s32 4294967192, %v381_v2 }
  0x14   :  { %v210_v13 = vsub.s32 %v482_v12, %v379_v1  ;;  %v217_v16 = vsub.s32 %v489_v14, %v379_v1  ;;  %v509_v22 = vadd.s32 4294967184, %v381_v2  ;;  %v512_v23 = vadd.s32 4294967176, %v381_v2 }
  0x15   :  { %v224_v17 = vsub.s32 %v492_v15, %v379_v1  ;;  %v231_v20 = vsub.s32 %v499_v18, %v379_v1  ;;  %v238_v21 = vsub.s32 %v502_v19, %v379_v1  ;;  %v521_v26 = vstv %s600_s2 }
  0x16   :  { %v245_v24 = vsub.s32 %v509_v22, %v379_v1  ;;  %v252_v25 = vsub.s32 %v512_v23, %v379_v1  ;;  %vm156_vm2 = vcmask 130112   ;;  %vm163_vm3 = vcmask 195712  }
  0x17   :  { %82 = vadd.xlane.f32.xlu0 %v81_v31  ;;  %85 = vadd.xlane.f32.xlu1 %v84_v32  ;;  %vm170_vm4 = vcmask 261312   ;;  %vm177_vm5 = vcmask 326912   ;;  %vm184_vm6 = vcmask 392512   ;;  %vm191_vm7 = vcmask 458112  }
  0x18   :  { %vm198_vm8 = vcmask 523712   ;;  %vm205_vm9 = vcmask 589312   ;;  %vm212_vm10 = vcmask 654912   ;;  %vm219_vm11 = vcmask 720512  }
  0x19   :  { %vm226_vm12 = vcmask 786112   ;;  %vm233_vm13 = vcmask 851712   ;;  %vm240_vm14 = vcmask 917312   ;;  %vm247_vm15 = vcmask 982912  }
  0x1a   :  { %vm254_vm0 = vcmask 1048512   ;;  %vm267_vm1 = vcmask 0  }
  0x1b   :  { %88 = vadd.xlane.f32.xlu0 %v87_v38  ;;  %91 = vadd.xlane.f32.xlu1 %v90_v39 }
  0x1f   :  { %94 = vadd.xlane.f32.xlu0 %v93_v47  ;;  %97 = vadd.xlane.f32.xlu1 %v96_v48 }
  0x23   :  { %100 = vadd.xlane.f32.xlu0 %v99_v57  ;;  %103 = vadd.xlane.f32.xlu1 %v102_v58 }
  0x27   :  { %106 = vadd.xlane.f32.xlu0 %v105_v0  ;;  %109 = vadd.xlane.f32.xlu1 %v108_v4 }
  0x2b   :  { %263 = vadd.xlane.f32.xlu0 %v262_v11 }
  0x98   :  { %v65_v27 = vpop.xlane.xlu0 %64  ;;  %v71_v28 = vpop.xlane.xlu1 %70 }
  0x99   :  { %v113_v29 = vadd.f32 %v521_v26, %v65_v27  ;;  %v115_v30 = vadd.f32 %v521_v26, %v71_v28 }
  0x9b   :  { %v150_v35 = vrot.slane %v113_v29, %v149_v7  ;;  %v162_v38 = vrot.slane %v115_v30, %v161_v44 }
  0x9c   :  { %v68_v31 = vpop.xlane.xlu0 %67  ;;  %v74_v32 = vpop.xlane.xlu1 %73 }
  0x9d   :  { %v114_v33 = vadd.f32 %v521_v26, %v68_v31  ;;  %v116_v34 = vadd.f32 %v521_v26, %v74_v32  ;;  %v265_v31 = vstv %s259_s27 }
  0x9f   :  { %v155_v36 = vrot.slane %v114_v33, %v154_v53  ;;  %v169_v37 = vrot.slane %v116_v34, %v168_v54 }
  0xa0   :  { %v77_v39 = vpop.xlane.xlu0 %76  ;;  %v80_v40 = vpop.xlane.xlu1 %79 }
  0xa1   :  { %v157_v41 = vsel %vm156_vm2, %v155_v36, %v150_v35  ;;  %v117_v43 = vadd.f32 %v521_v26, %v77_v39  ;;  %v118_v45 = vadd.f32 %v521_v26, %v80_v40 }
  0xa2   :  { %v164_v46 = vsel %vm163_vm3, %v162_v38, %v157_v41 }
  0xa3   :  { %v171_v47 = vsel %vm170_vm4, %v169_v37, %v164_v46  ;;  %v176_v2 = vrot.slane %v117_v43, %v175_v61  ;;  %v183_v7 = vrot.slane %v118_v45, %v182_v62 }
  0xa4   :  { %v83_v48 = vpop.xlane.xlu0 %82  ;;  %v86_v49 = vpop.xlane.xlu1 %85 }
  0xa5   :  { %v178_v50 = vsel %vm177_vm5, %v176_v2, %v171_v47  ;;  %v119_v42 = vadd.f32 %v521_v26, %v83_v48  ;;  %v120_v44 = vadd.f32 %v521_v26, %v86_v49 }
  0xa6   :  { %v185_v51 = vsel %vm184_vm6, %v183_v7, %v178_v50 }
  0xa7   :  { %v190_v52 = vrot.slane %v119_v42, %v189_v8  ;;  %v197_v53 = vrot.slane %v120_v44, %v196_v9 }
  0xa8   :  { %v89_v54 = vpop.xlane.xlu0 %88  ;;  %v92_v55 = vpop.xlane.xlu1 %91 }
  0xa9   :  { %v192_v56 = vsel %vm191_vm7, %v190_v52, %v185_v51  ;;  %v121_v57 = vadd.f32 %v521_v26, %v89_v54  ;;  %v122_v58 = vadd.f32 %v521_v26, %v92_v55 }
  0xaa   :  { %v199_v59 = vsel %vm198_vm8, %v197_v53, %v192_v56 }
  0xab   :  { %v204_v60 = vrot.slane %v121_v57, %v203_v3  ;;  %v211_v61 = vrot.slane %v122_v58, %v210_v13 }
  0xac   :  { %v95_v62 = vpop.xlane.xlu0 %94  ;;  %v98_v63 = vpop.xlane.xlu1 %97 }
  0xad   :  { %v206_v0 = vsel %vm205_vm9, %v204_v60, %v199_v59  ;;  %v123_v4 = vadd.f32 %v521_v26, %v95_v62  ;;  %v124_v5 = vadd.f32 %v521_v26, %v98_v63 }
  0xae   :  { %v213_v6 = vsel %vm212_vm10, %v211_v61, %v206_v0 }
  0xaf   :  { %v218_v8 = vrot.slane %v123_v4, %v217_v16  ;;  %v225_v9 = vrot.slane %v124_v5, %v224_v17 }
  0xb0   :  { %v101_v10 = vpop.xlane.xlu0 %100  ;;  %v104_v11 = vpop.xlane.xlu1 %103 }
  0xb1   :  { %v220_v12 = vsel %vm219_vm11, %v218_v8, %v213_v6  ;;  %v125_v3 = vadd.f32 %v521_v26, %v101_v10  ;;  %v126_v13 = vadd.f32 %v521_v26, %v104_v11 }
  0xb2   :  { %v227_v27 = vsel %vm226_vm12, %v225_v9, %v220_v12 }
  0xb3   :  { %v232_v14 = vrot.slane %v125_v3, %v231_v20  ;;  %v239_v15 = vrot.slane %v126_v13, %v238_v21 }
  0xb4   :  { %v107_v16 = vpop.xlane.xlu0 %106  ;;  %v110_v17 = vpop.xlane.xlu1 %109 }
  0xb5   :  { %v234_v28 = vsel %vm233_vm13, %v232_v14, %v227_v27  ;;  %v127_v29 = vadd.f32 %v521_v26, %v107_v16  ;;  %v128_v30 = vadd.f32 %v521_v26, %v110_v17 }
  0xb6   :  { %v241_v32 = vsel %vm240_vm14, %v239_v15, %v234_v28 }
  0xb7   :  { %v246_v18 = vrot.slane %v127_v29, %v245_v24  ;;  %v253_v19 = vrot.slane %v128_v30, %v252_v25 }
  0xb8   :  { %v264_v20 = vpop.xlane.xlu0 %263 }
  0xb9   :  { %v266_v21 = vmul.f32 %v265_v31, %v264_v20  ;;  %v248_v26 = vsel %vm247_vm15, %v246_v18, %v241_v32 }
  0xba   :  { %v255_v33 = vsel %vm254_vm0, %v253_v19, %v248_v26 }
  0xbb   :  { %257 = vst [vmem:[#allocation4] sm:$0x1] %v255_v33  ;;  %268 = vst.msk [vmem:[#allocation6] sm:$0x1] %vm267_vm1, %v266_v21 }
  0xbc   :  { %310 = shalt.err (!%p307_p4)
}
  0xbd   :  { %s311_s10 = scalar_lea.hbm %s602_s4, 16 }
  0xbe   :  { %p312_p5 = scmp.ne.s32.totalorder %s602_s4, %s311_s10  ;;  %p315_p6 = scmp.lt.u32.totalorder %s311_s10, %s602_s4 }
  0xc0   :  { %p317_p7 = pnand %p315_p6, %p312_p5 }
  0xc2   :  { %320 = shalt.err (!%p317_p7)
}
  0xc3   :  { %278 = dma.vmem_to_hbm [thread:$0]  %s276_s28, 16, %s602_s4, [#allocation5]  }
  0xc4   :  { %s321_s17 = scalar_lea.vmem %s566_s30, 16  ;;  %s325_s18 = scalar_lea.vmem %s566_s30, 32 }
  0xc5   :  { %p322_p8 = scmp.ne.s32.totalorder %s566_s30, %s321_s17  ;;  %p326_p9 = scmp.lt.s32.totalorder %s566_s30, %s566_s30 }
  0xc6   :  { %p327_p10 = scmp.lt.s32.totalorder %s325_s18, %s321_s17 }
  0xc8   :  { %p328_p11 = por %p327_p10, %p326_p9 }
  0xca   :  { %p329_p12 = pnand %p328_p11, %p322_p8 }
  0xcc   :  { %332 = shalt.err (!%p329_p12)
}
  0xcd   :  { %s333_s21 = scalar_lea.hbm %s603_s5, 16 }
  0xce   :  { %p334_p13 = scmp.ne.s32.totalorder %s603_s5, %s333_s21  ;;  %p337_p0 = scmp.lt.u32.totalorder %s333_s21, %s603_s5 }
  0xd0   :  { %p339_p1 = pnand %p337_p0, %p334_p13 }
  0xd2   :  { %342 = shalt.err (!%p339_p1)
}
  0xd3   :  { %288 = dma.vmem_to_hbm [thread:$0]  %s566_s30, 16, %s603_s5, [#allocation7]  }
  0xd4   :  { %343 = dma.done.wait [#allocation5], 16  }
  0xd5   :  { %344 = vsyncadd [#allocation5], 4294967280 }
  0xd6   :  { %345 = dma.done.wait [#allocation7], 16  }
  0xd7   :  { %346 = vsyncadd [#allocation7], 4294967280 }
  0xd8   :  { %295 = vsyncpa [#allocation5], 1 }
  0xd9   :  { %296 = vsyncpa [#allocation7], 1 }

</bundles_post_ra>
